<compile_context>
chip_gen: v5e
topology: v5e:2x2
jax: 0.10.0
libtpu: 0.0.40
codegen_flags: <defaults>
</compile_context>

<pallas_src>
import functools

import jax
import jax.numpy as jnp
import numpy as np
from jax import lax
from jax.experimental import pallas as pl
from jax.experimental.pallas import tpu as pltpu

D = 128
HALF = D // 2  # 64


def _build_fused_weight(w):
    """Rearranged block weight so ONE (T,128)@(128,256) matmul replaces the two
    per-patch (T,64)@(64,128) matmuls.

    w : (64, 128)  == torch Linear(64,128,bias=False).weight.T  (so e_patch @ w)

    With x = [e0 | e1] and c = clamp(x @ W_big, 0, 1):
      c[:,   0: 64] = clamp(e0 @ w)[:, :64]      c[:, 128:192] = clamp(e1 @ w)[:, :64]
      c[:,  64:128] = clamp(e1 @ w)[:, 64:]      c[:, 192:256] = clamp(e0 @ w)[:, 64:]
    so that  out = x * c[:, :128] + roll(x, 64) * c[:, 128:]   (exactly the module's combine).
    """
    w_lo = w[:, :HALF]                                   # (64, 64)
    w_hi = w[:, HALF:]                                   # (64, 64)
    z = jnp.zeros((HALF, HALF), w.dtype)
    top = jnp.concatenate([w_lo, z, z, w_hi], axis=1)    # rows multiplied by e0
    bot = jnp.concatenate([z, w_hi, w_lo, z], axis=1)    # rows multiplied by e1
    return jnp.concatenate([top, bot], axis=0)           # (128, 256)


def _agg_kernel(x_ref, idx_ref, w_ref, alpha_ref, out_ref):
    """One grid step: tile of rows -> fused matmul + combine + one-hot MXU scatter.

    x_ref     : VMEM (T, 128) f32       tile of message rows
    idx_ref   : VMEM (1, T)   int32     scatter indices for this tile
    w_ref     : VMEM (128, 256) f32     fused / rearranged fc_all weight
    alpha_ref : SMEM (1,) f32           learnable_param
    out_ref   : VMEM (dim_pad, 128) f32 resident accumulator (same block all steps)
    """
    @pl.when(pl.program_id(0) == 0)
    def _():
        out_ref[...] = jnp.zeros_like(out_ref)

    x = x_ref[...]                                                     # (T, 128)

    # fc_all (both patches at once) + clamp(0, 1) — single full-K MXU matmul.
    c = jnp.clip(jnp.dot(x, w_ref[...],
                         preferred_element_type=jnp.float32), 0.0, 1.0)  # (T, 256)

    # Combine: out = x * C_a + roll(x, 64) * C_b   (XLU lane rotation, free slot).
    x_roll = pltpu.roll(x, shift=HALF, axis=1)                         # [e1 | e0]
    out_rows = x * c[:, :D] + x_roll * c[:, D:]                        # (T, 128)

    # |alpha| * out + msg  (scatter is linear, so fold both scatters into one).
    comb = jnp.abs(alpha_ref[0]) * out_rows + x                        # (T, 128)

    # Scatter-sum via one-hot MXU matmul: (dim_pad, T) @ (T, 128).
    # Duplicate indices are summed by the contraction; padded rows of x are
    # zero so they contribute nothing; one-hot rows >= dim_size are all-zero
    # so padded output rows stay zero.
    idx = idx_ref[...]                                                 # (1, T)
    rows = lax.broadcasted_iota(jnp.int32, (out_ref.shape[0], idx.shape[1]), 0)
    one_hot = (rows == idx).astype(jnp.float32)                        # (dim_pad, T)
    out_ref[...] += jnp.dot(one_hot, comb, preferred_element_type=jnp.float32)


@functools.partial(jax.jit, static_argnames=("dim_size", "tile_rows"))
def aggregation_custom_forward(x, index, w, alpha, *, dim_size, tile_rows=512):
    """x: (N, 128) f32, index: (N,) int32 in [0, dim_size), w: (64, 128) f32,
    alpha: (1,) f32.  Returns (dim_size, 128) f32."""
    n = x.shape[0]
    assert x.shape[1] == D
    assert tile_rows % 128 == 0, "tile_rows must be a multiple of 128"

    # Pad rows to a multiple of tile_rows (padded rows are zero -> contribute 0)
    # and pad the output row count to a sublane-friendly multiple of 8.
    n_pad = max(tile_rows, ((n + tile_rows - 1) // tile_rows) * tile_rows)
    dim_pad = ((dim_size + 7) // 8) * 8
    if n_pad != n:
        x = jnp.pad(x, ((0, n_pad - n), (0, 0)))
        index = jnp.pad(index, (0, n_pad - n))

    w_big = _build_fused_weight(w.astype(jnp.float32))                 # (128, 256)
    idx2d = index.reshape(1, n_pad).astype(jnp.int32)

    grid = (n_pad // tile_rows,)

    cost = pl.CostEstimate(
        flops=2 * n_pad * D * (2 * D) + 2 * n_pad * dim_pad * D,
        transcendentals=0,
        bytes_accessed=4 * (n_pad * D + dim_pad * D + D * 2 * D) + 4 * n_pad,
    )

    out = pl.pallas_call(
        _agg_kernel,
        out_shape=jax.ShapeDtypeStruct((dim_pad, D), jnp.float32),
        grid_spec=pltpu.PrefetchScalarGridSpec(
            num_scalar_prefetch=0,
            grid=grid,
            in_specs=[
                pl.BlockSpec((tile_rows, D), lambda i: (i, 0)),          # x tile
                pl.BlockSpec((1, tile_rows), lambda i: (0, i)),          # index tile
                pl.BlockSpec((D, 2 * D), lambda i: (0, 0)),              # fused weight
                pl.BlockSpec(memory_space=pltpu.MemorySpace.SMEM),       # alpha
            ],
            out_specs=pl.BlockSpec((dim_pad, D), lambda i: (0, 0)),      # resident acc
        ),
        compiler_params=pltpu.CompilerParams(
            dimension_semantics=("arbitrary",)),
        cost_estimate=cost,
    )(x.astype(jnp.float32), idx2d, w_big, alpha.astype(jnp.float32))

    # TODO(synk): for very large dim_size (>~4K) the one-hot scatter matmul and
    # the resident accumulator should be tiled along dim_size instead.
    return out[:dim_size]


def _reference(x, index, w, alpha, dim_size):
    e0, e1 = x[:, :HALF], x[:, HALF:]
    c0 = jnp.clip(e0 @ w, 0.0, 1.0)
    c1 = jnp.clip(e1 @ w, 0.0, 1.0)
    out0 = e0 * c0[:, :HALF] + e1 * c1[:, :HALF]
    out1 = e0 * c0[:, HALF:] + e1 * c1[:, HALF:]
    out = jnp.concatenate([out0, out1], axis=-1)
    comb = jnp.abs(alpha[0]) * out + x
    return jax.ops.segment_sum(comb, index, num_segments=dim_size)


if __name__ == "__main__":
    key = jax.random.PRNGKey(0)
    k_x, k_w, k_i = jax.random.split(key, 3)

    n_rows = 300      # number of message rows (edges) — ragged on purpose
    dim_size = 10     # number of scatter targets (nodes) — not a multiple of 8

    x = jax.random.normal(k_x, (n_rows, D), dtype=jnp.float32)
    # torch Linear(64,128) default init: U(-1/sqrt(64), 1/sqrt(64)); w = W_torch.T
    bound = 1.0 / np.sqrt(HALF)
    w = jax.random.uniform(k_w, (HALF, D), minval=-bound, maxval=bound,
                           dtype=jnp.float32)
    index = jax.random.randint(k_i, (n_rows,), 0, dim_size, dtype=jnp.int32)
    # learnable_param initializes to 1e-5; use a non-trivial value so the whole
    # fc/clamp/combine path is actually exercised by the check.
    alpha = jnp.array([0.73], dtype=jnp.float32)

    ref = _reference(x, index, w, alpha, dim_size)

    # Multi-tile path (grid=3, tile_rows=128) and default single-tile path.
    out_a = jax.block_until_ready(
        aggregation_custom_forward(x, index, w, alpha,
                                   dim_size=dim_size, tile_rows=128))
    out_b = jax.block_until_ready(
        aggregation_custom_forward(x, index, w, alpha, dim_size=dim_size))

    np.testing.assert_allclose(np.asarray(out_a), np.asarray(ref),
                               rtol=1e-4, atol=1e-4)
    np.testing.assert_allclose(np.asarray(out_b), np.asarray(ref),
                               rtol=1e-4, atol=1e-4)
    print("KERNEL_OK")
</pallas_src>

<mosaic_0001>
module attributes {stable_mosaic.version = 11 : i64} {
  func.func @_agg_kernel(%arg0: i32, %arg1: memref<128x128xf32, #tpu.memory_space<vmem>>, %arg2: memref<1x128xi32, #tpu.memory_space<vmem>>, %arg3: memref<128x256xf32, #tpu.memory_space<vmem>>, %arg4: memref<1xf32, #tpu.memory_space<smem>>, %arg5: memref<16x128xf32, #tpu.memory_space<vmem>>) attributes {dimension_semantics = [#tpu.dimension_semantics<arbitrary>], iteration_bounds = array<i64: 3>, scalar_prefetch = 0 : i64, scratch_operands = 0 : i64, tpu.core_type = #tpu.core_type<tc>, window_params = [{transform_indices = @transform_0, window_bounds = array<i64: 128, 128>}, {transform_indices = @transform_1, window_bounds = array<i64: 1, 128>}, {pipeline_mode = #tpu.pipeline_mode<synchronous>, transform_indices = @transform_2, window_bounds = array<i64: 128, 256>}, {transform_indices = @transform_3, window_bounds = array<i64: 1>}, {pipeline_mode = #tpu.pipeline_mode<synchronous>, transform_indices = @transform_4, window_bounds = array<i64: 16, 128>}]} {
    %c0_i32 = arith.constant 0 : i32
    %0 = arith.cmpi eq, %arg0, %c0_i32 : i32
    %1 = arith.extui %0 : i1 to i32
    %c0_i32_0 = arith.constant 0 : i32
    %2 = arith.cmpi ne, %1, %c0_i32_0 : i32
    scf.if %2 {
      %cst_14 = arith.constant 0.000000e+00 : f32
      %31 = vector.broadcast %cst_14 : f32 to vector<16x128xf32>
      %c0_15 = arith.constant 0 : index
      %c0_16 = arith.constant 0 : index
      %32 = vector.load %arg5[%c0_15, %c0_16] : memref<16x128xf32, #tpu.memory_space<vmem>>, vector<16x128xf32>
      tpu.vector_store %arg5[%c0_15, %c0_16], %31 {strides = array<i32>} : memref<16x128xf32, #tpu.memory_space<vmem>>, vector<16x128xf32>,
    } else {
    }
    %c0 = arith.constant 0 : index
    %c0_1 = arith.constant 0 : index
    %3 = vector.load %arg1[%c0, %c0_1] : memref<128x128xf32, #tpu.memory_space<vmem>>, vector<128x128xf32>
    %c0_2 = arith.constant 0 : index
    %c0_3 = arith.constant 0 : index
    %4 = vector.load %arg3[%c0_2, %c0_3] : memref<128x256xf32, #tpu.memory_space<vmem>>, vector<128x256xf32>
    %cst = arith.constant dense<0.000000e+00> : vector<128x256xf32>
    %5 = tpu.matmul %3, %4, %cst {dimension_numbers = #tpu.dot_dimension_numbers<[1], [0], [0], [1], [0, 0, 1, 1], [], []>} : vector<128x128xf32>, vector<128x256xf32>, vector<128x256xf32> -> vector<128x256xf32>
    %cst_4 = arith.constant 0.000000e+00 : f32
    %cst_5 = arith.constant 1.000000e+00 : f32
    %6 = vector.broadcast %cst_4 : f32 to vector<128x256xf32>
    %7 = arith.maximumf %6, %5 : vector<128x256xf32>
    %8 = vector.broadcast %cst_5 : f32 to vector<128x256xf32>
    %9 = arith.minimumf %8, %7 : vector<128x256xf32>
    %c64_i32 = arith.constant 64 : i32
    %10 = tpu.dynamic_rotate %3 by %c64_i32 dim 1 : vector<128x128xf32>, i32 -> vector<128x128xf32>
    %11 = vector.extract_strided_slice %9 {offsets = [0, 0], sizes = [128, 128], strides = [1, 1]} : vector<128x256xf32> to vector<128x128xf32>
    %12 = arith.mulf %3, %11 : vector<128x128xf32>
    %13 = vector.extract_strided_slice %9 {offsets = [0, 128], sizes = [128, 128], strides = [1, 1]} : vector<128x256xf32> to vector<128x128xf32>
    %14 = arith.mulf %10, %13 : vector<128x128xf32>
    %15 = arith.addf %12, %14 : vector<128x128xf32>
    %c0_6 = arith.constant 0 : index
    %16 = memref.load %arg4[%c0_6] : memref<1xf32, #tpu.memory_space<smem>>
    %17 = math.absf %16 : f32
    %18 = vector.broadcast %17 : f32 to vector<128x128xf32>
    %19 = arith.mulf %18, %15 : vector<128x128xf32>
    %20 = arith.addf %19, %3 : vector<128x128xf32>
    %c0_7 = arith.constant 0 : index
    %c0_8 = arith.constant 0 : index
    %21 = vector.load %arg2[%c0_7, %c0_8] : memref<1x128xi32, #tpu.memory_space<vmem>>, vector<1x128xi32>
    %22 = tpu.iota {dimensions = array<i32: 0>} : vector<16x128xi32>
    %23 = vector.broadcast %21 : vector<1x128xi32> to vector<16x128xi32>
    %24 = arith.cmpi eq, %22, %23 : vector<16x128xi32>
    %25 = arith.extui %24 : vector<16x128xi1> to vector<16x128xi32>
    %26 = arith.sitofp %25 : vector<16x128xi32> to vector<16x128xf32>
    %c0_9 = arith.constant 0 : index
    %c0_10 = arith.constant 0 : index
    %27 = vector.load %arg5[%c0_9, %c0_10] : memref<16x128xf32, #tpu.memory_space<vmem>>, vector<16x128xf32>
    %cst_11 = arith.constant dense<0.000000e+00> : vector<16x128xf32>
    %28 = tpu.matmul %26, %20, %cst_11 {dimension_numbers = #tpu.dot_dimension_numbers<[1], [0], [0], [1], [0, 0, 1, 1], [], []>} : vector<16x128xf32>, vector<128x128xf32>, vector<16x128xf32> -> vector<16x128xf32>
    %29 = arith.addf %27, %28 : vector<16x128xf32>
    %c0_12 = arith.constant 0 : index
    %c0_13 = arith.constant 0 : index
    %30 = vector.load %arg5[%c0_12, %c0_13] : memref<16x128xf32, #tpu.memory_space<vmem>>, vector<16x128xf32>
    tpu.vector_store %arg5[%c0_12, %c0_13], %29 {strides = array<i32>} : memref<16x128xf32, #tpu.memory_space<vmem>>, vector<16x128xf32>,
    return
  }
  func.func @transform_0(%arg0: i32) -> (i32, i32) {
    %c0_i32 = arith.constant 0 : i32
    %c0_i32_0 = arith.constant 0 : i32
    return %arg0, %c0_i32 : i32, i32
  }
  func.func @transform_1(%arg0: i32) -> (i32, i32) {
    %c0_i32 = arith.constant 0 : i32
    %c0_i32_0 = arith.constant 0 : i32
    return %c0_i32, %arg0 : i32, i32
  }
  func.func @transform_2(%arg0: i32) -> (i32, i32) {
    %c0_i32 = arith.constant 0 : i32
    %c0_i32_0 = arith.constant 0 : i32
    %c0_i32_1 = arith.constant 0 : i32
    return %c0_i32, %c0_i32_0 : i32, i32
  }
  func.func @transform_3(%arg0: i32) -> i32 {
    %c0_i32 = arith.constant 0 : i32
    %c0_i32_0 = arith.constant 0 : i32
    return %c0_i32 : i32
  }
  func.func @transform_4(%arg0: i32) -> (i32, i32) {
    %c0_i32 = arith.constant 0 : i32
    %c0_i32_0 = arith.constant 0 : i32
    %c0_i32_1 = arith.constant 0 : i32
    return %c0_i32, %c0_i32_0 : i32, i32
  }
}

</mosaic_0001>

<bundles_post_ra>
// kernel: aggregation_custom_forward.1
= control target key start
LH: loop header
LB: loop body
LE: loop exit
PB: predicated region body
PF: predicated region fallthrough
CT: control target
= control target key end

     0   :  { %s1163_s0 = inlined_call_operand.vmem [shape: f32[384,128], index: 0, kind: input, shape index: {}]   ;;  %s1164_s1 = inlined_call_operand.vmem [shape: s32[1,384], index: 1, kind: input, shape index: {}]   ;;  %s1165_s2 = inlined_call_operand.vmem [shape: f32[128,256], index: 2, kind: input, shape index: {}]   ;;  %s1166_s3 = inlined_call_operand.<no memory space> [shape: f32[1], index: 3, kind: input, shape index: {}]   ;;  %s1167_s4 = inlined_call_operand.hbm [shape: f32[16,128], index: 4, kind: output, shape index: {}]  }
   0x1   :  { %9 = sst [smem:[#allocation2]] %s1166_s3 }
   0x2   :  { %10 = vsyncpa [#allocation4], 0  ;;  %s805_s17 = smov 0  }
   0x3 LB: > { %s811_s18 = sadd.s32 4294967295, %s769_s17   ;;  %p666_p0 = scmp.ge.s32.totalorder %s769_s17, 1  ;;  %s769_s17 = sphi %s805_s17, %s16_s17  }
   0x4   : > { %p168_p1 = scmp.lt.s32.totalorder %s769_s17, 4 }
   0x6   : > { %p169_p2 = pnand %p666_p0, %p168_p1 }
   0x8   : > { %172 = sbr.rel (%p169_p2) target bundleno = 425 (0x1a9), region = 36 }
   0xd   : > { %s667_s3 = sshll.u32 %s811_s18, 4  ;;  %p198_p3 = scmp.lt.s32.totalorder %s811_s18, 2 }
   0xe   : > { %p193_p4 = scmp.lt.s32.totalorder %s667_s3, 47  ;;  %p669_p5 = scmp.ne.s32.totalorder %s811_s18, 0 }
   0xf   : > { %s818_s19 = scalar_select %p198_p3, %s811_s18, 2 }
  0x10   : > { %s1177_s3 = smov (!%p193_p4, %s667_s3), 47  ;;  %204 = sbr.rel (%p669_p5) target bundleno = 24 (0x18), region = 40 }
  0x11   : > { %s200_s22 = scalar_lea.vmem %s1164_s1, %s818_s19  ;;  %s668_s23 = sshll.u32 %s1177_s3, 3 }
  0x12   : > { %s827_s26 = scalar_lea.vmem %s1163_s0, %s668_s23 }
  0x15   : > { %v771_v0 = vmov 0.0  }
  0x16   : > { %205 = vst [vmem:[#allocation3] sm:$0xff] %v771_v0 }
  0x17   : > { %206 = vst [vmem:[#allocation3 + $0x8] sm:$0xff] %v771_v0 }
  0x18 PF: > { %v253_v1 = vld [vmem:[%s1165_s2 + $0xf0] sm:$0xff]  ;;  %v254_v2 = vld [vmem:[%s1165_s2 + $0xf8] sm:$0xff]  ;;  %v251_v3 = vld [vmem:[%s1165_s2 + $0xe0] sm:$0xff]  ;;  %s772_s27 = smov 64   ;;  %s774_s19 = smov [#allocation3]  }
  0x19   : > { %678 = vmatpush.msra.mxu3 %v253_v1  ;;  %694 = vmatpush.msra.mxu2 %v254_v2  ;;  %v252_v4 = vld [vmem:[%s1165_s2 + $0xe8] sm:$0xff]  ;;  %v249_v5 = vld [vmem:[%s1165_s2 + $0xd0] sm:$0xff]  ;;  %v250_v6 = vld [vmem:[%s1165_s2 + $0xd8] sm:$0xff]  ;;  %s611_s5 = sshll.u32 %s1167_s4, 4  ;;  %p714_p6 = scmp.eq.s32.totalorder %s811_s18, 2  ;;  %s612_s5 = int_to_ptr.hbm [resolvable:$true] %s611_s5 }
  0x1a   : > { %255 = vmatpush.msra.mxu0 %v253_v1  ;;  %320 = vmatpush.msra.mxu1 %v254_v2  ;;  %v247_v7 = vld [vmem:[%s1165_s2 + $0xc0] sm:$0xff]  ;;  %v248_v8 = vld [vmem:[%s1165_s2 + $0xc8] sm:$0xff]  ;;  %v245_v9 = vld [vmem:[%s1165_s2 + $0xb0] sm:$0xff]  ;;  %s775_s6 = smov 128   ;;  %s776_s7 = smov 8  }
  0x1b   : > { %679 = vmatpush.msra.mxu3 %v251_v3  ;;  %695 = vmatpush.msra.mxu2 %v252_v4  ;;  %v246_v10 = vld [vmem:[%s1165_s2 + $0xb8] sm:$0xff]  ;;  %v243_v11 = vld [vmem:[%s1165_s2 + $0xa0] sm:$0xff]  ;;  %v244_v12 = vld [vmem:[%s1165_s2 + $0xa8] sm:$0xff] }
  0x1c   : > { %256 = vmatpush.msra.mxu0 %v251_v3  ;;  %321 = vmatpush.msra.mxu1 %v252_v4  ;;  %v241_v13 = vld [vmem:[%s1165_s2 + $0x90] sm:$0xff]  ;;  %v242_v14 = vld [vmem:[%s1165_s2 + $0x98] sm:$0xff]  ;;  %v239_v15 = vld [vmem:[%s1165_s2 + $0x80] sm:$0xff] }
  0x1d   : > { %680 = vmatpush.msra.mxu3 %v249_v5  ;;  %696 = vmatpush.msra.mxu2 %v250_v6  ;;  %v240_v16 = vld [vmem:[%s1165_s2 + $0x88] sm:$0xff]  ;;  %v237_v17 = vld [vmem:[%s1165_s2 + $0x70] sm:$0xff]  ;;  %v238_v18 = vld [vmem:[%s1165_s2 + $0x78] sm:$0xff] }
  0x1e   : > { %257 = vmatpush.msra.mxu0 %v249_v5  ;;  %322 = vmatpush.msra.mxu1 %v250_v6  ;;  %v235_v19 = vld [vmem:[%s1165_s2 + $0x60] sm:$0xff]  ;;  %v236_v20 = vld [vmem:[%s1165_s2 + $0x68] sm:$0xff]  ;;  %v891_v21 = vld [vmem:[%s827_s26 + $0x78] sm:$0xff] }
  0x1f   : > { %681 = vmatpush.msra.mxu3 %v247_v7  ;;  %697 = vmatpush.msra.mxu2 %v248_v8  ;;  %v233_v22 = vld [vmem:[%s1165_s2 + $0x50] sm:$0xff]  ;;  %v234_v23 = vld [vmem:[%s1165_s2 + $0x58] sm:$0xff]  ;;  %v231_v24 = vld [vmem:[%s1165_s2 + $0x40] sm:$0xff] }
  0x20   : > { %258 = vmatpush.msra.mxu0 %v247_v7  ;;  %323 = vmatpush.msra.mxu1 %v248_v8  ;;  %v232_v25 = vld [vmem:[%s1165_s2 + $0x48] sm:$0xff]  ;;  %v229_v26 = vld [vmem:[%s1165_s2 + $0x30] sm:$0xff]  ;;  %v230_v27 = vld [vmem:[%s1165_s2 + $0x38] sm:$0xff] }
  0x21   : > { %682 = vmatpush.msra.mxu3 %v245_v9  ;;  %698 = vmatpush.msra.mxu2 %v246_v10  ;;  %v227_v28 = vld [vmem:[%s1165_s2 + $0x20] sm:$0xff]  ;;  %v228_v29 = vld [vmem:[%s1165_s2 + $0x28] sm:$0xff]  ;;  %v920_v30 = vld [vmem:[%s827_s26 + $0x70] sm:$0xff] }
  0x22   : > { %259 = vmatpush.msra.mxu0 %v245_v9  ;;  %324 = vmatpush.msra.mxu1 %v246_v10  ;;  %v225_v31 = vld [vmem:[%s1165_s2 + $0x10] sm:$0xff]  ;;  %v226_v32 = vld [vmem:[%s1165_s2 + $0x18] sm:$0xff]  ;;  %v223_v33 = vld [vmem:[%s1165_s2] sm:$0xff] }
  0x23   : > { %683 = vmatpush.msra.mxu3 %v243_v11  ;;  %699 = vmatpush.msra.mxu2 %v244_v12  ;;  %v224_v34 = vld [vmem:[%s1165_s2 + $0x8] sm:$0xff]  ;;  %v945_v37 = vld [vmem:[%s827_s26] sm:$0xff]  ;;  %v948_v38 = vld [vmem:[%s827_s26 + $0x58] sm:$0xff] }
  0x24   : > { %260 = vmatpush.msra.mxu0 %v243_v11  ;;  %325 = vmatpush.msra.mxu1 %v244_v12  ;;  %v937_v35 = vld [vmem:[%s827_s26 + $0x48] sm:$0xff]  ;;  %1170 = vst [vmem:[#allocation6_spill] sm:$0xff] %v945_v37  ;;  %v959_v39 = vld [vmem:[%s827_s26 + $0x50] sm:$0xff]  ;;  %v962_v40 = vld [vmem:[%s827_s26 + $0x60] sm:$0xff] }
  0x25   : > { %684 = vmatpush.msra.mxu3 %v241_v13  ;;  %700 = vmatpush.msra.mxu2 %v242_v14  ;;  %v940_v36 = vld [vmem:[%s827_s26 + $0x68] sm:$0xff]  ;;  %v970_v42 = vld [vmem:[%s827_s26 + $0x30] sm:$0xff]  ;;  %v981_v43 = vld [vmem:[%s827_s26 + $0x40] sm:$0xff] }
  0x26   : > { %261 = vmatpush.msra.mxu0 %v241_v13  ;;  %326 = vmatpush.msra.mxu1 %v242_v14  ;;  %v967_v41 = vld [vmem:[%s827_s26 + $0x8] sm:$0xff]  ;;  %v984_v44 = vld [vmem:[%s827_s26 + $0x38] sm:$0xff]  ;;  %v989_v45 = vld [vmem:[%s827_s26 + $0x10] sm:$0xff] }
  0x27   : > { %685 = vmatpush.msra.mxu3 %v239_v15  ;;  %701 = vmatpush.msra.mxu2 %v240_v16  ;;  %1171 = vst [vmem:[#allocation7_spill] sm:$0xff] %v967_v41  ;;  %v992_v46 = vld [vmem:[%s827_s26 + $0x18] sm:$0xff]  ;;  %v1003_v47 = vld [vmem:[%s827_s26 + $0x28] sm:$0xff]  ;;  %v1008_v48 = vld [vmem:[%s827_s26 + $0x20] sm:$0xff]  ;;  %s1078_s26 = sld [smem:[#allocation2]] }
  0x28   : > { %262 = vmatpush.msra.mxu0 %v239_v15  ;;  %327 = vmatpush.msra.mxu1 %v240_v16 }
  0x29   : > { %686 = vmatpush.msra.mxu3 %v237_v17  ;;  %702 = vmatpush.msra.mxu2 %v238_v18 }
  0x2a   : > { %263 = vmatpush.msra.mxu0 %v237_v17  ;;  %328 = vmatpush.msra.mxu1 %v238_v18 }
  0x2b   : > { %687 = vmatpush.msra.mxu3 %v235_v19  ;;  %703 = vmatpush.msra.mxu2 %v236_v20 }
  0x2c   : > { %479 = vrot.lane.b32.xlu0 %v891_v21, %s772_s27  ;;  %264 = vmatpush.msra.mxu0 %v235_v19 }
  0x2d   : > { %688 = vmatpush.msra.mxu3 %v233_v22  ;;  %704 = vmatpush.msra.mxu2 %v234_v23  ;;  %s530_s25 = sand.u32 2147483647, %s1078_s26 }
  0x2e   : > { %329 = vmatpush.msra.mxu1 %v236_v20  ;;  %265 = vmatpush.msra.mxu0 %v233_v22 }
  0x2f   : > { %689 = vmatpush.msra.mxu3 %v231_v24  ;;  %705 = vmatpush.msra.mxu2 %v232_v25 }
  0x30   : > { %330 = vmatpush.msra.mxu1 %v234_v23  ;;  %266 = vmatpush.msra.mxu0 %v231_v24 }
  0x31   : > { %690 = vmatpush.msra.mxu3 %v229_v26  ;;  %706 = vmatpush.msra.mxu2 %v230_v27 }
  0x32   : > { %331 = vmatpush.msra.mxu1 %v232_v25  ;;  %267 = vmatpush.msra.mxu0 %v229_v26 }
  0x33   : > { %691 = vmatpush.msra.mxu3 %v227_v28  ;;  %707 = vmatpush.msra.mxu2 %v228_v29 }
  0x34   : > { %332 = vmatpush.msra.mxu1 %v230_v27  ;;  %477 = vrot.lane.b32.xlu0 %v920_v30, %s772_s27 }
  0x35   : > { %692 = vmatpush.msra.mxu3 %v225_v31  ;;  %708 = vmatpush.msra.mxu2 %v226_v32 }
  0x36   : > { %268 = vmatpush.msra.mxu0 %v227_v28  ;;  %333 = vmatpush.msra.mxu1 %v228_v29 }
  0x37   : > { %693 = vmatpush.msra.mxu3 %v223_v33  ;;  %709 = vmatpush.msra.mxu2 %v224_v34 }
  0x38   : > { %298 = vmatmul.f32.vlgmr.msra.gmra.mxu3 %v937_v35  ;;  %363 = vmatmul.f32.vlgmr.msra.gmra.mxu2 %v937_v35 }
  0x39   : > { %269 = vmatpush.msra.mxu0 %v225_v31  ;;  %334 = vmatpush.msra.mxu1 %v226_v32 }
  0x3a   : > { %475 = vrot.lane.b32.xlu1 %v940_v36, %s772_s27  ;;  %471 = vrot.lane.b32.xlu2 %v948_v38, %s772_s27 }
  0x3b   : > { %270 = vmatpush.msra.mxu0 %v223_v33  ;;  %335 = vmatpush.msra.mxu1 %v224_v34 }
  0x3c   : > { %271 = vmatmul.f32.vlgmr.msra.gmra.mxu0 %v945_v37  ;;  %336 = vmatmul.f32.vlgmr.msra.gmra.mxu1 %v945_v37 }
  0x3d   : > { %467 = vrot.lane.b32.xlu0 %v937_v35, %s772_s27 }
  0x40   : > { %301 = vmatmul.f32.gmra.mxu3 %v959_v39  ;;  %366 = vmatmul.f32.gmra.mxu2 %v959_v39 }
  0x42   : > { %473 = vrot.lane.b32.xlu1 %v962_v40, %s772_s27  ;;  %469 = vrot.lane.b32.xlu2 %v959_v39, %s772_s27 }
  0x44   : > { %274 = vmatmul.f32.gmra.mxu0 %v967_v41  ;;  %339 = vmatmul.f32.gmra.mxu1 %v967_v41 }
  0x45   : > { %461 = vrot.lane.b32.xlu0 %v970_v42, %s772_s27 }
  0x48   : > { %304 = vmatmul.f32.gmra.mxu3 %v948_v38  ;;  %369 = vmatmul.f32.gmra.mxu2 %v948_v38 }
  0x4a   : > { %465 = vrot.lane.b32.xlu1 %v981_v43, %s772_s27  ;;  %463 = vrot.lane.b32.xlu2 %v984_v44, %s772_s27 }
  0x4c   : > { %277 = vmatmul.f32.gmra.mxu0 %v989_v45  ;;  %342 = vmatmul.f32.gmra.mxu1 %v989_v45 }
  0x4d   : > { %455 = vrot.lane.b32.xlu0 %v992_v46, %s772_s27 }
  0x50   : > { %307 = vmatmul.f32.gmra.mxu3 %v962_v40  ;;  %372 = vmatmul.f32.gmra.mxu2 %v962_v40 }
  0x52   : > { %459 = vrot.lane.b32.xlu1 %v1003_v47, %s772_s27  ;;  %457 = vrot.lane.b32.xlu2 %v1008_v48, %s772_s27 }
  0x54   : > { %280 = vmatmul.f32.gmra.mxu0 %v992_v46  ;;  %345 = vmatmul.f32.gmra.mxu1 %v992_v46 }
  0x55   : > { %449 = vrot.lane.b32.xlu0 %v945_v37, %s772_s27 }
  0x58   : > { %310 = vmatmul.f32.gmra.mxu3 %v940_v36  ;;  %375 = vmatmul.f32.gmra.mxu2 %v940_v36 }
  0x5a   : > { %453 = vrot.lane.b32.xlu1 %v989_v45, %s772_s27  ;;  %451 = vrot.lane.b32.xlu2 %v967_v41, %s772_s27 }
  0x5c   : > { %283 = vmatmul.f32.gmra.mxu0 %v1008_v48  ;;  %348 = vmatmul.f32.gmra.mxu1 %v1008_v48 }
  0x60   : > { %313 = vmatmul.f32.gmra.mxu3 %v920_v30  ;;  %378 = vmatmul.f32.gmra.mxu2 %v920_v30 }
  0x64   : > { %286 = vmatmul.f32.gmra.mxu0 %v1003_v47  ;;  %351 = vmatmul.f32.gmra.mxu1 %v1003_v47 }
  0x68   : > { %316 = vmatmul.f32.gmra.mxu3 %v891_v21  ;;  %381 = vmatmul.f32.gmra.mxu2 %v891_v21 }
  0x6c   : > { %289 = vmatmul.f32.gmra.mxu0 %v970_v42  ;;  %354 = vmatmul.f32.gmra.mxu1 %v970_v42 }
  0x74   : > { %292 = vmatmul.f32.gmra.mxu0 %v984_v44  ;;  %357 = vmatmul.f32.gmra.mxu1 %v984_v44 }
  0x7c   : > { %295 = vmatmul.f32.gmra.mxu0 %v981_v43  ;;  %360 = vmatmul.f32.gmra.mxu1 %v981_v43 }
  0x94   : > { %v1038_v49 = vpop.permute.xlu2 %471 }
  0x9c   : > { %v1042_v51 = vpop.permute.xlu2 %469 }
  0x9e   : > { %v1040_v50 = vpop.permute.xlu0 %479 }
  0xa4   : > { %v1046_v53 = vpop.permute.xlu2 %463 }
  0xa6   : > { %v1044_v52 = vpop.permute.xlu0 %477 }
  0xac   : > { %v1052_v56 = vpop.permute.xlu2 %457  ;;  %v476_v27 = vpop.permute.xlu1 %475 }
  0xaf   : > { %v1048_v54 = vpop.permute.xlu0 %467 }
  0xb4   : > { %v452_v5 = vpop.permute.xlu2 %451 }
  0xb7   : > { %v1050_v55 = vpop.permute.xlu0 %461 }
  0xb9   : > { %v272_v57 = vpop.f32.mrf.mxu0  ;;  %v337_v58 = vpop.f32.mrf.mxu1 }
  0xba   : > { %v385_v61 = vmax.f32 %v272_v57, 0.0  ;;  %v386_v63 = vmax.f32 %v337_v58, 0.0 }
  0xbb   : > { %v299_v59 = vpop.f32.mrf.mxu3  ;;  %v364_v60 = vpop.f32.mrf.mxu2 }
  0xbc   : > { %v417_v2 = vmin.f32 %v385_v61, 1.0  ;;  %v418_v8 = vmin.f32 %v386_v63, 1.0  ;;  %v403_v57 = vmax.f32 %v299_v59, 0.0  ;;  %v404_v58 = vmax.f32 %v364_v60, 0.0  ;;  %v474_v61 = vpop.permute.xlu1 %473 }
  0xbe   : > { %v481_v11 = vmul.f32 %v417_v2, %v945_v37 }
  0xbf   : > { %v1054_v62 = vpop.permute.xlu0 %455 }
  0xc1   : > { %v275_v0 = vpop.f32.mrf.mxu0  ;;  %v340_v1 = vpop.f32.mrf.mxu1 }
  0xc2   : > { %v387_v3 = vmax.f32 %v275_v0, 0.0  ;;  %v388_v4 = vmax.f32 %v340_v1, 0.0 }
  0xc3   : > { %v302_v6 = vpop.f32.mrf.mxu3  ;;  %v367_v7 = vpop.f32.mrf.mxu2 }
  0xc4   : > { %v419_v9 = vmin.f32 %v387_v3, 1.0  ;;  %v420_v10 = vmin.f32 %v388_v4, 1.0 }
  0xc6   : > { %v482_v12 = vmul.f32 %v419_v9, %v967_v41  ;;  %v498_v13 = vmul.f32 %v452_v5, %v420_v10  ;;  %v435_v5 = vmin.f32 %v403_v57, 1.0  ;;  %v405_v9 = vmax.f32 %v302_v6, 0.0 }
  0xc7   : > { %v450_v14 = vpop.permute.xlu0 %449  ;;  %v406_v10 = vmax.f32 %v367_v7, 0.0 }
  0xc8   : > { %v497_v15 = vmul.f32 %v450_v14, %v418_v8  ;;  %v1058_v16 = vadd.f32 %v498_v13, %v482_v12  ;;  %v436_v8 = vmin.f32 %v404_v58, 1.0 }
  0xc9   : > { %v1060_v17 = vpop.f32.mrf.mxu0  ;;  %v1062_v18 = vpop.f32.mrf.mxu1  ;;  %v438_v57 = vmin.f32 %v406_v10, 1.0 }
  0xca   : > { %v1064_v19 = vadd.f32 %v497_v15, %v481_v11 }
  0xcb   : > { %v305_v20 = vpop.f32.mrf.mxu3  ;;  %v370_v22 = vpop.f32.mrf.mxu2 }
  0xcc   : > { %1172 = vst [vmem:[#allocation8_spill] sm:$0xff] %v1064_v19  ;;  %v407_v15 = vmax.f32 %v305_v20, 0.0  ;;  %v408_v59 = vmax.f32 %v370_v22, 0.0 }
  0xd1   : > { %v1066_v23 = vpop.f32.mrf.mxu0  ;;  %v1068_v24 = vpop.f32.mrf.mxu1 }
  0xd3   : > { %v308_v25 = vpop.f32.mrf.mxu3  ;;  %v373_v26 = vpop.f32.mrf.mxu2 }
  0xd4   : > { %v409_v11 = vmax.f32 %v308_v25, 0.0  ;;  %v410_v12 = vmax.f32 %v373_v26, 0.0 }
  0xd6   : > { %v441_v6 = vmin.f32 %v409_v11, 1.0  ;;  %v442_v7 = vmin.f32 %v410_v12, 1.0  ;;  %v507_v11 = vmul.f32 %v1042_v51, %v438_v57  ;;  %v1095_v51 = vstv %s530_s25 }
  0xd8   : > { %v493_v12 = vmul.f32 %v441_v6, %v962_v40 }
  0xd9   : > { %v1070_v28 = vpop.f32.mrf.mxu0  ;;  %v1072_v29 = vpop.f32.mrf.mxu1 }
  0xdb   : > { %v311_v31 = vpop.f32.mrf.mxu3  ;;  %v376_v32 = vpop.f32.mrf.mxu2 }
  0xdc   : > { %v411_v3 = vmax.f32 %v311_v31, 0.0  ;;  %v412_v4 = vmax.f32 %v376_v32, 0.0  ;;  %v506_v31 = vmul.f32 %v1048_v54, %v436_v8  ;;  %v437_v32 = vmin.f32 %v405_v9, 1.0 }
  0xde   : > { %v443_v60 = vmin.f32 %v411_v3, 1.0  ;;  %v444_v37 = vmin.f32 %v412_v4, 1.0  ;;  %v440_v3 = vmin.f32 %v408_v59, 1.0  ;;  %v491_v10 = vmul.f32 %v437_v32, %v959_v39 }
  0xe0   : > { %v494_v4 = vmul.f32 %v443_v60, %v940_v36  ;;  %v510_v54 = vmul.f32 %v476_v27, %v444_v37  ;;  %v508_v37 = vmul.f32 %v1038_v49, %v440_v3  ;;  %v523_v57 = vadd.f32 %v507_v11, %v491_v10 }
  0xe1   : > { %v1074_v33 = vpop.f32.mrf.mxu0  ;;  %v1076_v34 = vpop.f32.mrf.mxu1  ;;  %v390_v3 = vmax.f32 %v1062_v18, 0.0 }
  0xe2   : > { %v526_v27 = vadd.f32 %v510_v54, %v494_v4 }
  0xe3   : > { %v314_v63 = vpop.f32.mrf.mxu3  ;;  %v379_v0 = vpop.f32.mrf.mxu2 }
  0xe4   : > { %v413_v1 = vmax.f32 %v314_v63, 0.0  ;;  %v414_v2 = vmax.f32 %v379_v0, 0.0  ;;  %v490_v63 = vmul.f32 %v435_v5, %v937_v35 }
  0xe6   : > { %v445_v13 = vmin.f32 %v413_v1, 1.0  ;;  %v446_v14 = vmin.f32 %v414_v2, 1.0  ;;  %v1084_v1 = vpop.permute.xlu1 %465  ;;  %v439_v2 = vmin.f32 %v407_v15, 1.0  ;;  %v522_v5 = vadd.f32 %v506_v31, %v490_v63 }
  0xe8   : > { %v495_v58 = vmul.f32 %v445_v13, %v920_v30  ;;  %v511_v20 = vmul.f32 %v1044_v52, %v446_v14  ;;  %v509_v13 = vmul.f32 %v474_v61, %v442_v7  ;;  %v492_v59 = vmul.f32 %v439_v2, %v948_v38 }
  0xe9   : > { %v290_v41 = vpop.f32.mrf.mxu0  ;;  %v355_v19 = vpop.f32.mrf.mxu1  ;;  %v389_v61 = vmax.f32 %v1060_v17, 0.0  ;;  %v541_v7 = vmul.f32 %v1095_v51, %v522_v5  ;;  %v545_v2 = vmul.f32 %v1095_v51, %v526_v27 }
  0xea   : > { %v527_v52 = vadd.f32 %v511_v20, %v495_v58  ;;  %v525_v6 = vadd.f32 %v509_v13, %v493_v12  ;;  %v524_v20 = vadd.f32 %v508_v37, %v492_v59 }
  0xeb   : > { %v317_v25 = vpop.f32.mrf.mxu3  ;;  %v382_v26 = vpop.f32.mrf.mxu2 }
  0xec   : > { %v415_v22 = vmax.f32 %v317_v25, 0.0  ;;  %v416_v0 = vmax.f32 %v382_v26, 0.0  ;;  %v397_v26 = vmax.f32 %v290_v41, 0.0  ;;  %v546_v49 = vmul.f32 %v1095_v51, %v527_v52 }
  0xed   : > { %v391_v41 = vmax.f32 %v1066_v23, 0.0  ;;  %v561_v52 = vadd.f32 %v545_v2, %v940_v36  ;;  %v543_v23 = vmul.f32 %v1095_v51, %v524_v20 }
  0xee   : > { %v447_v8 = vmin.f32 %v415_v22, 1.0  ;;  %v448_v9 = vmin.f32 %v416_v0, 1.0  ;;  %v395_v22 = vmax.f32 %v1074_v33, 0.0  ;;  %v396_v0 = vmax.f32 %v1076_v34, 0.0  ;;  %v460_v5 = vpop.permute.xlu1 %459 }
  0xef   : > { %v392_v33 = vmax.f32 %v1068_v24, 0.0  ;;  %v429_v34 = vmin.f32 %v397_v26, 1.0  ;;  %v562_v18 = vadd.f32 %v546_v49, %v920_v30  ;;  %v542_v30 = vmul.f32 %v1095_v51, %v523_v57 }
  0xf0   : > { %v496_v14 = vmul.f32 %v447_v8, %v891_v21  ;;  %v512_v15 = vmul.f32 %v1040_v50, %v448_v9  ;;  %v398_v50 = vmax.f32 %v355_v19, 0.0  ;;  %v393_v19 = vmax.f32 %v1070_v28, 0.0 }
  0xf1   : > { %v293_v60 = vpop.f32.mrf.mxu0  ;;  %v358_v63 = vpop.f32.mrf.mxu1  ;;  %v394_v8 = vmax.f32 %v1072_v29, 0.0  ;;  %v544_v9 = vmul.f32 %v1095_v51, %v525_v6  ;;  %v427_v11 = vmin.f32 %v395_v22, 1.0  ;;  %v428_v12 = vmin.f32 %v396_v0, 1.0 }
  0xf2   : > { %v528_v31 = vadd.f32 %v512_v15, %v496_v14  ;;  %v399_v32 = vmax.f32 %v293_v60, 0.0  ;;  %v400_v25 = vmax.f32 %v358_v63, 0.0  ;;  %v430_v10 = vmin.f32 %v398_v50, 1.0 }
  0xf3   : > { %v425_v24 = vmin.f32 %v393_v19, 1.0  ;;  %v426_v59 = vmin.f32 %v394_v8, 1.0  ;;  %v560_v37 = vadd.f32 %v544_v9, %v962_v40  ;;  %v487_v27 = vmul.f32 %v429_v34, %v970_v42 }
  0xf4   : > { %v547_v58 = vmul.f32 %v1095_v51, %v528_v31  ;;  %v431_v4 = vmin.f32 %v399_v32, 1.0  ;;  %v432_v17 = vmin.f32 %v400_v25, 1.0  ;;  %v503_v60 = vmul.f32 %v1050_v55, %v430_v10 }
  0xf5   : > { %v423_v31 = vmin.f32 %v391_v41, 1.0  ;;  %v424_v32 = vmin.f32 %v392_v33, 1.0  ;;  %v559_v25 = vadd.f32 %v543_v23, %v948_v38  ;;  %v502_v6 = vmul.f32 %v460_v5, %v428_v12  ;;  %v1173_v12 = vld [vmem:[#allocation8_spill] sm:$0xff] }
  0xf6   : > { %v563_v54 = vadd.f32 %v547_v58, %v891_v21  ;;  %v488_v28 = vmul.f32 %v431_v4, %v984_v44  ;;  %v504_v29 = vmul.f32 %v1046_v53, %v432_v17  ;;  %v486_v53 = vmul.f32 %v427_v11, %v1003_v47  ;;  %v454_v2 = vpop.permute.xlu1 %453 }
  0xf7   : > { %v421_v57 = vmin.f32 %v389_v61, 1.0  ;;  %v422_v58 = vmin.f32 %v390_v3, 1.0  ;;  %v558_v55 = vadd.f32 %v542_v30, %v959_v39  ;;  %v485_v49 = vmul.f32 %v425_v24, %v1008_v48 }
  0xf8   : > { %577 = vmatpush.msrb.mxu2 %v563_v54  ;;  %v520_v26 = vadd.f32 %v504_v29, %v488_v28  ;;  %v501_v20 = vmul.f32 %v1052_v56, %v426_v59  ;;  %v519_v22 = vadd.f32 %v503_v60, %v487_v27  ;;  %v484_v38 = vmul.f32 %v423_v31, %v992_v46 }
  0xf9   : > { %v296_v13 = vpop.f32.mrf.mxu0  ;;  %v361_v21 = vpop.f32.mrf.mxu1  ;;  %v557_v4 = vadd.f32 %v541_v7, %v937_v35  ;;  %v500_v17 = vmul.f32 %v1054_v62, %v424_v32  ;;  %v483_v3 = vmul.f32 %v421_v57, %v989_v45  ;;  %v499_v54 = vmul.f32 %v454_v2, %v422_v58 }
  0xfa   : > { %v401_v14 = vmax.f32 %v296_v13, 0.0  ;;  %v402_v15 = vmax.f32 %v361_v21, 0.0  ;;  %578 = vmatpush.msrb.mxu2 %v562_v18  ;;  %v539_v39 = vmul.f32 %v1095_v51, %v520_v26  ;;  %v517_v56 = vadd.f32 %v501_v20, %v485_v49  ;;  %v1174_v21 = vld [vmem:[#allocation7_spill] sm:$0xff] }
  0xfb   : > { %v538_v41 = vmul.f32 %v1095_v51, %v519_v22  ;;  %v516_v19 = vadd.f32 %v500_v17, %v484_v38  ;;  %v515_v7 = vadd.f32 %v499_v54, %v483_v3 }
  0xfc   : > { %v433_v36 = vmin.f32 %v401_v14, 1.0  ;;  %v434_v63 = vmin.f32 %v402_v15, 1.0  ;;  %579 = vmatpush.msrb.mxu2 %v561_v52  ;;  %v555_v35 = vadd.f32 %v539_v39, %v984_v44  ;;  %v536_v9 = vmul.f32 %v1095_v51, %v517_v56  ;;  %v576_v14 = vld [vmem:[#allocation3 + $0x8] sm:$0xff] }
  0xfd   : > { %v554_v8 = vadd.f32 %v538_v41, %v970_v42  ;;  %v534_v10 = vmul.f32 %v1095_v51, %v515_v7  ;;  %v565_v44 = vlaneseq  ;;  %v533_v42 = vmul.f32 %v1095_v51, %v1058_v16 }
  0xfe   : > { %v489_v50 = vmul.f32 %v433_v36, %v981_v43  ;;  %v505_v40 = vmul.f32 %v1084_v1, %v434_v63  ;;  %580 = vmatpush.msrb.mxu2 %v560_v37  ;;  %v518_v1 = vadd.f32 %v502_v6, %v486_v53  ;;  %v552_v34 = vadd.f32 %v536_v9, %v1008_v48  ;;  %v730_v48 = vld [vmem:[%s200_s22] ss:$0 sm:$0xff]  ;;  %s609_s22 = sshll.u32 %s774_s19, 4  ;;  %s610_s22 = int_to_ptr.vmem [resolvable:$true] %s609_s22 }
  0xff   : > { %v550_v11 = vadd.f32 %v534_v10, %v989_v45  ;;  %v566_v13 = vshrl.u32 %v565_v44, 7  ;;  %v549_v52 = vadd.f32 %v533_v42, %v1174_v21  ;;  %v773_v16 = vmov 1.0  }
 0x100   : > { %v521_v0 = vadd.f32 %v505_v40, %v489_v50  ;;  %581 = vmatpush.msrb.mxu2 %v559_v25  ;;  %v537_v62 = vmul.f32 %v1095_v51, %v518_v1 }
 0x101   : > { %vm569_vm0 = vcmp.eq.s32.totalorder %v566_v13, %v730_v48  ;;  %v567_v45 = vadd.s32 8, %v566_v13 }
 0x102   : > { %582 = vmatpush.msrb.mxu2 %v558_v55  ;;  %v540_v61 = vmul.f32 %v1095_v51, %v521_v0  ;;  %v553_v33 = vadd.f32 %v537_v62, %v1003_v47  ;;  %v532_v47 = vmul.f32 %v1095_v51, %v1173_v12 }
 0x103   : > { %vm570_vm1 = vcmp.eq.s32.totalorder %v567_v45, %v730_v48 }
 0x104   : > { %583 = vmatpush.msrb.mxu2 %v557_v4  ;;  %v556_v5 = vadd.f32 %v540_v61, %v981_v43  ;;  %v535_v43 = vmul.f32 %v1095_v51, %v516_v19  ;;  %v575_v51 = vld [vmem:[#allocation3] sm:$0xff] }
 0x106   : > { %584 = vmatpush.msrb.mxu2 %v556_v5  ;;  %v551_v18 = vadd.f32 %v535_v43, %v992_v46  ;;  %v1175_v46 = vld [vmem:[#allocation6_spill] sm:$0xff] }
 0x107   : > { %v548_v23 = vadd.f32 %v532_v47, %v1175_v46 }
 0x108   : > { %585 = vmatpush.msrb.mxu2 %v555_v35 }
 0x10a   : > { %586 = vmatpush.msrb.mxu2 %v554_v8 }
 0x10c   : > { %587 = vmatpush.msrb.mxu2 %v553_v33 }
 0x10e   : > { %588 = vmatpush.msrb.mxu2 %v552_v34 }
 0x110   : > { %589 = vmatpush.msrb.mxu2 %v551_v18 }
 0x112   : > { %590 = vmatpush.msrb.mxu2 %v550_v11 }
 0x114   : > { %591 = vmatpush.msrb.mxu2 %v549_v52 }
 0x116   : > { %592 = vmatpush.msrb.mxu2 %v548_v23 }
 0x117   : > { %672 = vmatmul.msk.f32.vlgmr.msrb.gmra.mxu2 %vm569_vm0, %v773_v16 }
 0x11f   : > { %673 = vmatmul.msk.f32.gmra.mxu2 %vm570_vm1, %v773_v16 }
 0x19a   : > { %v594_v28 = vpop.f32.mrf.mxu2 }
 0x19b   : > { %v600_v29 = vadd.f32 %v594_v28, %v575_v51 }
 0x19d   : > { %602 = vst [vmem:[#allocation3] sm:$0xff] %v600_v29 }
 0x1a2   : > { %v597_v15 = vpop.f32.mrf.mxu2 }
 0x1a3   : > { %v601_v24 = vadd.f32 %v597_v15, %v576_v14 }
 0x1a5   : > { %603 = vst [vmem:[#allocation3 + $0x8] sm:$0xff] %v601_v24 }
 0x1a6   : > { %711 = dma.vmem_to_hbm [thread:$0]  (%p714_p6), %s610_s22, 256, %s612_s5, [#allocation4], %s775_s6, %s775_s6, %s776_s7  }
 0x1a7   : > { %764 = dma.done.wait (%p714_p6), [#allocation4], 256  }
 0x1a8   : > { %766 = vsyncadd (%p714_p6), [#allocation4], 4294967040 }
 0x1a9 PF: > { %s16_s17 = sadd.s32 1, %s769_s17  }
 0x1aa   : > { %p13_p7 = scmp.ge.s32.totalorder %s16_s17, 5  }
 0x1ac   :  { %15 = sbr.rel (!%p13_p7) target bundleno = 3 (0x3), region = 70 }
 0x1b1   :  { %628 = vsyncpa [#allocation4], 1 }
 0x1b2   :  { %630 = vsyncpa [#allocation4 + $0x1], 1 }

</bundles_post_ra>
